<compile_context>
chip_gen: v6e
topology: v6e:2x2x1
jax: 0.10.0
libtpu: 0.0.40
codegen_flags: <defaults>
</compile_context>

<pallas_src>
import functools

import jax
import jax.numpy as jnp
from jax.experimental import pallas as pl
from jax.experimental.pallas import tpu as pltpu


_VMEM_LIMIT = 48 * 1024 * 1024   # fits v7x (64 MiB physical) and raises v5e's 16 MiB default


def _round_up(x, m):
    return ((x + m - 1) // m) * m


# ----------------------- tiled matmul + bias + activation -----------------------

def _matmul_bias_act_kernel(x_ref, w_ref, b_ref, o_ref, acc_ref, *, act):
    k = pl.program_id(1)

    @pl.when(k == 0)
    def _():
        acc_ref[...] = jnp.zeros_like(acc_ref)

    acc_ref[...] += jnp.dot(x_ref[...], w_ref[...],
                            preferred_element_type=jnp.float32)

    @pl.when(k == pl.num_programs(1) - 1)
    def _():
        y = acc_ref[...] + b_ref[...]
        if act == "silu":
            y = y * jax.nn.sigmoid(y)
        o_ref[...] = y.astype(o_ref.dtype)


def matmul_bias_act(x, w, b, act="none", tm=512, tk=512):
    """x: (M, K), w: (K, N), b: (N,) -> (M, N) f32. bf16 MXU inputs, f32 acc."""
    M, K = x.shape
    Kw, N = w.shape
    assert K == Kw
    tm = min(tm, _round_up(M, 16))
    M_pad = _round_up(M, tm)
    if K > 1024:
        tk = 512                      # multiple of 128 -> tileable lane dim
        K_pad = _round_up(K, tk)
    else:
        tk = K                        # full-K block (full-dim exemption)
        K_pad = K
    n_m, n_k = M_pad // tm, K_pad // tk

    xb = x.astype(jnp.bfloat16)
    wb = w.astype(jnp.bfloat16)
    if M_pad != M or K_pad != K:
        xb = jnp.pad(xb, ((0, M_pad - M), (0, K_pad - K)))
    if K_pad != K:
        wb = jnp.pad(wb, ((0, K_pad - K), (0, 0)))
    b2 = b.reshape(1, N).astype(jnp.float32)

    out = pl.pallas_call(
        functools.partial(_matmul_bias_act_kernel, act=act),
        out_shape=jax.ShapeDtypeStruct((M_pad, N), jnp.float32),
        grid_spec=pltpu.PrefetchScalarGridSpec(
            num_scalar_prefetch=0,
            grid=(n_m, n_k),
            in_specs=[
                pl.BlockSpec((tm, tk), lambda i, k: (i, k)),
                pl.BlockSpec((tk, N), lambda i, k: (k, 0)),
                pl.BlockSpec((1, N), lambda i, k: (0, 0)),
            ],
            out_specs=pl.BlockSpec((tm, N), lambda i, k: (i, 0)),
            scratch_shapes=[pltpu.VMEM((tm, N), jnp.float32)],
        ),
        compiler_params=pltpu.CompilerParams(
            dimension_semantics=("parallel", "arbitrary"),
            vmem_limit_bytes=_VMEM_LIMIT),
    )(xb, wb, b2)
    return out[:M] if M_pad != M else out


# ---------- fused (conv_out @ quant_conv) matmul + reparameterization sample ----------

def _matmul_sample_kernel(x_ref, wm_ref, wl_ref, bm_ref, bl_ref, noise_ref,
                          o_ref, accm_ref, accl_ref):
    k = pl.program_id(1)

    @pl.when(k == 0)
    def _():
        accm_ref[...] = jnp.zeros_like(accm_ref)
        accl_ref[...] = jnp.zeros_like(accl_ref)

    x = x_ref[...]
    accm_ref[...] += jnp.dot(x, wm_ref[...], preferred_element_type=jnp.float32)
    accl_ref[...] += jnp.dot(x, wl_ref[...], preferred_element_type=jnp.float32)

    @pl.when(k == pl.num_programs(1) - 1)
    def _():
        mean = accm_ref[...] + bm_ref[...]
        logvar = jnp.clip(accl_ref[...] + bl_ref[...], -30.0, 20.0)
        std = jnp.exp(0.5 * logvar)
        o_ref[...] = (mean + std * noise_ref[...]).astype(o_ref.dtype)


def matmul_sample(x, wm, wl, bm, bl, noise, tm=512, tk=512):
    """x: (M, K); wm/wl: (K, L); bm/bl: (L,); noise: (M, L) -> sampled latent (M, L)."""
    M, K = x.shape
    L = wm.shape[1]
    tm = min(tm, _round_up(M, 16))
    M_pad = _round_up(M, tm)
    if K > 1024:
        tk = 512
        K_pad = _round_up(K, tk)
    else:
        tk = K
        K_pad = K
    n_m, n_k = M_pad // tm, K_pad // tk

    xb = x.astype(jnp.bfloat16)
    wmb = wm.astype(jnp.bfloat16)
    wlb = wl.astype(jnp.bfloat16)
    nz = noise.astype(jnp.float32)
    if M_pad != M or K_pad != K:
        xb = jnp.pad(xb, ((0, M_pad - M), (0, K_pad - K)))
        nz = jnp.pad(nz, ((0, M_pad - M), (0, 0)))
    if K_pad != K:
        wmb = jnp.pad(wmb, ((0, K_pad - K), (0, 0)))
        wlb = jnp.pad(wlb, ((0, K_pad - K), (0, 0)))
    bm2 = bm.reshape(1, L).astype(jnp.float32)
    bl2 = bl.reshape(1, L).astype(jnp.float32)

    out = pl.pallas_call(
        _matmul_sample_kernel,
        out_shape=jax.ShapeDtypeStruct((M_pad, L), jnp.float32),
        grid_spec=pltpu.PrefetchScalarGridSpec(
            num_scalar_prefetch=0,
            grid=(n_m, n_k),
            in_specs=[
                pl.BlockSpec((tm, tk), lambda i, k: (i, k)),
                pl.BlockSpec((tk, L), lambda i, k: (k, 0)),
                pl.BlockSpec((tk, L), lambda i, k: (k, 0)),
                pl.BlockSpec((1, L), lambda i, k: (0, 0)),
                pl.BlockSpec((1, L), lambda i, k: (0, 0)),
                pl.BlockSpec((tm, L), lambda i, k: (i, 0)),
            ],
            out_specs=pl.BlockSpec((tm, L), lambda i, k: (i, 0)),
            scratch_shapes=[pltpu.VMEM((tm, L), jnp.float32),
                            pltpu.VMEM((tm, L), jnp.float32)],
        ),
        compiler_params=pltpu.CompilerParams(
            dimension_semantics=("parallel", "arbitrary"),
            vmem_limit_bytes=_VMEM_LIMIT),
    )(xb, wmb, wlb, bm2, bl2, nz)
    return out[:M] if M_pad != M else out


# ------------------------- two-pass hw-tiled GroupNorm + SiLU -------------------------

def _gn_stats_kernel(x_ref, ga_ref, mean_ref, inv_ref, s1_ref, s2_ref, *, eps):
    t = pl.program_id(1)

    @pl.when(t == 0)
    def _():
        s1_ref[...] = jnp.zeros_like(s1_ref)
        s2_ref[...] = jnp.zeros_like(s2_ref)

    x = x_ref[0]                                        # (thw, C)
    s1_ref[...] += jnp.sum(x, axis=0, keepdims=True)
    s2_ref[...] += jnp.sum(x * x, axis=0, keepdims=True)

    @pl.when(t == pl.num_programs(1) - 1)
    def _():
        ga = ga_ref[...]                                # (C, C) group-average matrix
        mean_c = jnp.dot(s1_ref[...], ga, preferred_element_type=jnp.float32)
        msq_c = jnp.dot(s2_ref[...], ga, preferred_element_type=jnp.float32)
        var_c = jnp.maximum(msq_c - mean_c * mean_c, 0.0)   # clamp: no rsqrt(neg)
        mean_ref[...] = mean_c
        inv_ref[...] = jax.lax.rsqrt(var_c + eps)


def _gn_apply_kernel(x_ref, mean_ref, inv_ref, g_ref, b_ref, o_ref):
    x = x_ref[0]
    y = (x - mean_ref[...]) * inv_ref[...] * g_ref[...] + b_ref[...]
    o_ref[0] = (y * jax.nn.sigmoid(y)).astype(o_ref.dtype)   # SiLU


def _pick_hw_tile(hw, target=512):
    if hw <= target:
        return hw
    for t in range(target, 7, -1):
        if hw % t == 0 and t % 8 == 0:
            return t
    return hw


def groupnorm_silu(x_nhwc, gamma, beta, groups, eps=1e-6):
    N, H, W, C = x_nhwc.shape
    assert C % groups == 0
    cpg = C // groups
    hw = H * W
    thw = _pick_hw_tile(hw)
    n_t = hw // thw
    x2 = x_nhwc.reshape(N, hw, C).astype(jnp.float32)
    gid = jnp.arange(C) // cpg
    ga = (gid[:, None] == gid[None, :]).astype(jnp.float32) / float(hw * cpg)
    g2 = gamma.reshape(1, C).astype(jnp.float32)
    b2 = beta.reshape(1, C).astype(jnp.float32)

    mean_c, inv_c = pl.pallas_call(
        functools.partial(_gn_stats_kernel, eps=eps),
        out_shape=(jax.ShapeDtypeStruct((N, C), jnp.float32),
                   jax.ShapeDtypeStruct((N, C), jnp.float32)),
        grid_spec=pltpu.PrefetchScalarGridSpec(
            num_scalar_prefetch=0,
            grid=(N, n_t),
            in_specs=[
                pl.BlockSpec((1, thw, C), lambda n, t: (n, t, 0)),
                pl.BlockSpec((C, C), lambda n, t: (0, 0)),
            ],
            out_specs=[pl.BlockSpec((1, C), lambda n, t: (n, 0)),
                       pl.BlockSpec((1, C), lambda n, t: (n, 0))],
            scratch_shapes=[pltpu.VMEM((1, C), jnp.float32),
                            pltpu.VMEM((1, C), jnp.float32)],
        ),
        compiler_params=pltpu.CompilerParams(
            dimension_semantics=("parallel", "arbitrary"),
            vmem_limit_bytes=_VMEM_LIMIT),
    )(x2, ga)

    out = pl.pallas_call(
        _gn_apply_kernel,
        out_shape=jax.ShapeDtypeStruct((N, hw, C), jnp.float32),
        grid_spec=pltpu.PrefetchScalarGridSpec(
            num_scalar_prefetch=0,
            grid=(N, n_t),
            in_specs=[
                pl.BlockSpec((1, thw, C), lambda n, t: (n, t, 0)),
                pl.BlockSpec((1, C), lambda n, t: (n, 0)),
                pl.BlockSpec((1, C), lambda n, t: (n, 0)),
                pl.BlockSpec((1, C), lambda n, t: (0, 0)),
                pl.BlockSpec((1, C), lambda n, t: (0, 0)),
            ],
            out_specs=pl.BlockSpec((1, thw, C), lambda n, t: (n, t, 0)),
        ),
        compiler_params=pltpu.CompilerParams(
            dimension_semantics=("parallel", "parallel"),
            vmem_limit_bytes=_VMEM_LIMIT),
    )(x2, mean_c, inv_c, g2, b2)
    return out.reshape(N, H, W, C)


# ----------------------------------- JAX glue -----------------------------------

def _im2col(x_nhwc, k, stride, pad):
    """x: (N, H, W, C) -> cols (N*Ho*Wo, k*k*C), feature order (kh, kw, Cin)."""
    if pad > 0:
        x_nhwc = jnp.pad(x_nhwc, ((0, 0), (pad, pad), (pad, pad), (0, 0)))
    N, H, W, C = x_nhwc.shape
    Ho = (H - k) // stride + 1
    Wo = (W - k) // stride + 1
    patches = []
    for di in range(k):
        for dj in range(k):
            patches.append(
                x_nhwc[:, di:di + stride * Ho:stride, dj:dj + stride * Wo:stride, :])
    cols = jnp.concatenate(patches, axis=-1)       # (N, Ho, Wo, k*k*C)
    return cols.reshape(N * Ho * Wo, k * k * C), N, Ho, Wo


def conv2d(x_nhwc, w_oihw, bias, stride=1, pad=1, act="none"):
    """PyTorch-layout weights (Cout, Cin, kh, kw); compute in the Pallas matmul."""
    Cout, Cin, kh, kw = w_oihw.shape
    # TODO(synk): fold the kh*kw shift loop into the Pallas K grid axis instead
    # of materializing im2col; emitted in bf16 here to halve the HBM blow-up.
    cols, N, Ho, Wo = _im2col(x_nhwc.astype(jnp.bfloat16), kh, stride, pad)
    wmat = jnp.transpose(w_oihw, (2, 3, 1, 0)).reshape(kh * kw * Cin, Cout)
    y = matmul_bias_act(cols, wmat, bias, act=act)
    return y.reshape(N, Ho, Wo, Cout)


def resnet_block(x, p, prefix, groups):
    h = groupnorm_silu(x, p[f"{prefix}_gn1_g"], p[f"{prefix}_gn1_b"], groups)
    h = conv2d(h, p[f"{prefix}_conv1_w"], p[f"{prefix}_conv1_b"], 1, 1)
    h = groupnorm_silu(h, p[f"{prefix}_gn2_g"], p[f"{prefix}_gn2_b"], groups)
    h = conv2d(h, p[f"{prefix}_conv2_w"], p[f"{prefix}_conv2_b"], 1, 1)
    return x + h  # residual add (cheap elementwise glue)


def vae_encode_sample(x_nchw, params, noise_key, groups=8, latent=4):
    """TorchVAEEncoder.forward: encode(x).latent_dist.sample(). NCHW in/out."""
    x = jnp.transpose(x_nchw, (0, 2, 3, 1)).astype(jnp.float32)   # -> NHWC
    h = conv2d(x, params["conv_in_w"], params["conv_in_b"], 1, 1)
    h = resnet_block(h, params, "res1", groups)
    h = conv2d(h, params["down_w"], params["down_b"], stride=2, pad=1)
    h = groupnorm_silu(h, params["norm_out_g"], params["norm_out_b"], groups)

    # Fold conv_out (3x3 -> 2*latent) and quant_conv (1x1, 2L->2L) into one
    # matmul; fuse the diagonal-Gaussian sample into its epilogue.
    co_w, co_b = params["conv_out_w"], params["conv_out_b"]       # (2L,C,3,3),(2L,)
    q_w, q_b = params["quant_w"], params["quant_b"]               # (2L,2L,1,1),(2L,)
    Cout2, Cin, kh, kw = co_w.shape
    w_out_mat = jnp.transpose(co_w, (2, 3, 1, 0)).reshape(kh * kw * Cin, Cout2)
    w_q_mat = q_w[:, :, 0, 0].T                                   # (2L_in, 2L_out)
    w_eff = w_out_mat @ w_q_mat                                   # (K, 2L)
    b_eff = co_b @ w_q_mat + q_b                                  # (2L,)

    cols, N, Ho, Wo = _im2col(h.astype(jnp.bfloat16), kh, 1, 1)
    M = N * Ho * Wo
    noise = jax.random.normal(noise_key, (M, latent), jnp.float32)
    z = matmul_sample(cols,
                      w_eff[:, :latent], w_eff[:, latent:],
                      b_eff[:latent], b_eff[latent:], noise)
    z = z.reshape(N, Ho, Wo, latent)
    return jnp.transpose(z, (0, 3, 1, 2))                         # -> NCHW


def init_params(key, cin=3, c=32, latent=4):
    ks = jax.random.split(key, 8)

    def w(k, shape, scale=0.05):
        return scale * jax.random.normal(k, shape, jnp.float32)

    zeros = lambda n: jnp.zeros((n,), jnp.float32)
    ones = lambda n: jnp.ones((n,), jnp.float32)
    return {
        "conv_in_w": w(ks[0], (c, cin, 3, 3)), "conv_in_b": zeros(c),
        "res1_gn1_g": ones(c), "res1_gn1_b": zeros(c),
        "res1_conv1_w": w(ks[1], (c, c, 3, 3)), "res1_conv1_b": zeros(c),
        "res1_gn2_g": ones(c), "res1_gn2_b": zeros(c),
        "res1_conv2_w": w(ks[2], (c, c, 3, 3)), "res1_conv2_b": zeros(c),
        "down_w": w(ks[3], (c, c, 3, 3)), "down_b": zeros(c),
        "norm_out_g": ones(c), "norm_out_b": zeros(c),
        "conv_out_w": w(ks[4], (2 * latent, c, 3, 3)), "conv_out_b": zeros(2 * latent),
        "quant_w": w(ks[5], (2 * latent, 2 * latent, 1, 1)), "quant_b": zeros(2 * latent),
    }


if __name__ == "__main__":
    key = jax.random.PRNGKey(0)
    kx, kp, kn = jax.random.split(key, 3)
    x = jax.random.normal(kx, (2, 3, 16, 16), jnp.float32)   # NCHW, PyTorch-style
    params = init_params(kp)
    z = vae_encode_sample(x, params, kn)
    z = jax.block_until_ready(z)
    assert z.shape == (2, 4, 8, 8) and z.dtype == jnp.float32
    assert bool(jnp.all(jnp.isfinite(z)))
    print("KERNEL_OK")
</pallas_src>

<mosaic_0001>
module attributes {stable_mosaic.version = 11 : i64} {
  func.func @_matmul_bias_act_kernel(%arg0: i32, %arg1: i32, %arg2: memref<512x27xbf16, #tpu.memory_space<vmem>>, %arg3: memref<27x32xbf16, #tpu.memory_space<vmem>>, %arg4: memref<1x32xf32, #tpu.memory_space<vmem>>, %arg5: memref<512x32xf32, #tpu.memory_space<vmem>>, %arg6: memref<512x32xf32, #tpu.memory_space<vmem>>) attributes {dimension_semantics = [#tpu.dimension_semantics<parallel>, #tpu.dimension_semantics<arbitrary>], iteration_bounds = array<i64: 1, 1>, scalar_prefetch = 0 : i64, scratch_operands = 1 : i64, tpu.core_type = #tpu.core_type<tc>, window_params = [{transform_indices = @transform_0, window_bounds = array<i64: 512, 27>}, {transform_indices = @transform_1, window_bounds = array<i64: 27, 32>}, {pipeline_mode = #tpu.pipeline_mode<synchronous>, transform_indices = @transform_2, window_bounds = array<i64: 1, 32>}, {transform_indices = @transform_3, window_bounds = array<i64: 512, 32>}]} {
    %c0_i32 = arith.constant 0 : i32
    %0 = arith.cmpi eq, %arg1, %c0_i32 : i32
    %1 = arith.extui %0 : i1 to i32
    %c0_i32_0 = arith.constant 0 : i32
    %2 = arith.cmpi ne, %1, %c0_i32_0 : i32
    scf.if %2 {
      %cst_10 = arith.constant 0.000000e+00 : f32
      %12 = vector.broadcast %cst_10 : f32 to vector<512x32xf32>
      %c0_11 = arith.constant 0 : index
      %c0_12 = arith.constant 0 : index
      %13 = vector.load %arg6[%c0_11, %c0_12] : memref<512x32xf32, #tpu.memory_space<vmem>>, vector<512x32xf32>
      tpu.vector_store %arg6[%c0_11, %c0_12], %12 {strides = array<i32>} : memref<512x32xf32, #tpu.memory_space<vmem>>, vector<512x32xf32>,
    } else {
    }
    %c0 = arith.constant 0 : index
    %c0_1 = arith.constant 0 : index
    %3 = vector.load %arg6[%c0, %c0_1] : memref<512x32xf32, #tpu.memory_space<vmem>>, vector<512x32xf32>
    %c0_2 = arith.constant 0 : index
    %c0_3 = arith.constant 0 : index
    %4 = vector.load %arg2[%c0_2, %c0_3] : memref<512x27xbf16, #tpu.memory_space<vmem>>, vector<512x27xbf16>
    %c0_4 = arith.constant 0 : index
    %c0_5 = arith.constant 0 : index
    %5 = vector.load %arg3[%c0_4, %c0_5] : memref<27x32xbf16, #tpu.memory_space<vmem>>, vector<27x32xbf16>
    %cst = arith.constant dense<0.000000e+00> : vector<512x32xf32>
    %6 = tpu.matmul %4, %5, %cst {dimension_numbers = #tpu.dot_dimension_numbers<[1], [0], [0], [1], [0, 0, 1, 1], [], []>} : vector<512x27xbf16>, vector<27x32xbf16>, vector<512x32xf32> -> vector<512x32xf32>
    %7 = arith.addf %3, %6 : vector<512x32xf32>
    %c0_6 = arith.constant 0 : index
    %c0_7 = arith.constant 0 : index
    %8 = vector.load %arg6[%c0_6, %c0_7] : memref<512x32xf32, #tpu.memory_space<vmem>>, vector<512x32xf32>
    tpu.vector_store %arg6[%c0_6, %c0_7], %7 {strides = array<i32>} : memref<512x32xf32, #tpu.memory_space<vmem>>, vector<512x32xf32>,
    %c0_i32_8 = arith.constant 0 : i32
    %9 = arith.cmpi eq, %arg1, %c0_i32_8 : i32
    %10 = arith.extui %9 : i1 to i32
    %c0_i32_9 = arith.constant 0 : i32
    %11 = arith.cmpi ne, %10, %c0_i32_9 : i32
    scf.if %11 {
      %c0_10 = arith.constant 0 : index
      %c0_11 = arith.constant 0 : index
      %12 = vector.load %arg6[%c0_10, %c0_11] : memref<512x32xf32, #tpu.memory_space<vmem>>, vector<512x32xf32>
      %c0_12 = arith.constant 0 : index
      %c0_13 = arith.constant 0 : index
      %13 = vector.load %arg4[%c0_12, %c0_13] : memref<1x32xf32, #tpu.memory_space<vmem>>, vector<1x32xf32>
      %14 = vector.broadcast %13 : vector<1x32xf32> to vector<512x32xf32>
      %15 = arith.addf %12, %14 : vector<512x32xf32>
      %c0_14 = arith.constant 0 : index
      %c0_15 = arith.constant 0 : index
      %16 = vector.load %arg5[%c0_14, %c0_15] : memref<512x32xf32, #tpu.memory_space<vmem>>, vector<512x32xf32>
      tpu.vector_store %arg5[%c0_14, %c0_15], %15 {strides = array<i32>} : memref<512x32xf32, #tpu.memory_space<vmem>>, vector<512x32xf32>,
    } else {
    }
    return
  }
  func.func @transform_0(%arg0: i32, %arg1: i32) -> (i32, i32) {
    %c0_i32 = arith.constant 0 : i32
    return %arg0, %arg1 : i32, i32
  }
  func.func @transform_1(%arg0: i32, %arg1: i32) -> (i32, i32) {
    %c0_i32 = arith.constant 0 : i32
    %c0_i32_0 = arith.constant 0 : i32
    return %arg1, %c0_i32 : i32, i32
  }
  func.func @transform_2(%arg0: i32, %arg1: i32) -> (i32, i32) {
    %c0_i32 = arith.constant 0 : i32
    %c0_i32_0 = arith.constant 0 : i32
    %c0_i32_1 = arith.constant 0 : i32
    return %c0_i32, %c0_i32_0 : i32, i32
  }
  func.func @transform_3(%arg0: i32, %arg1: i32) -> (i32, i32) {
    %c0_i32 = arith.constant 0 : i32
    %c0_i32_0 = arith.constant 0 : i32
    return %arg0, %c0_i32 : i32, i32
  }
}

</mosaic_0001>

<bundles_post_ra>
// kernel: tpu_custom_call.1
= control target key start
LH: loop header
LB: loop body
LE: loop exit
PB: predicated region body
PF: predicated region fallthrough
CT: control target
= control target key end

     0   :  { %vm484_vm0 = vcmask 1044480   ;;  %vm485_vm1 = vcmask 1045504   ;;  %v1324_v1 = vmov 65535   ;;  %vm387_vm2 = vcmask 220160   ;;  %s2012_s1 = inlined_call_operand.vmem [shape: bf16[27,32], index: 1, kind: input, shape index: {}]   ;;  %s2013_s0 = inlined_call_operand.vmem [shape: bf16[512,27], index: 0, kind: input, shape index: {}]   ;;  %s2014_s2 = inlined_call_operand.vmem [shape: f32[1,32], index: 2, kind: input, shape index: {}]   ;;  %s2015_s3 = inlined_call_operand.vmem [shape: f32[512,32], index: 3, kind: output, shape index: {}]  }
   0x1   :  { %v1290_v0 = vld [vmem:[%s2012_s1 + $0x8] sm:$0x3f]   ;;  %v486_v2 = vsel %vm484_vm0, 4294967295, %v1324_v1  ;;  %v1292_v4 = vld [vmem:[%s2013_s0] sm:$0xff]   ;;  %vm19_vm3 = vcmask 261120   ;;  %v1325_v8 = vmov 0.0  }
   0x2   :  { %v487_v3 = vsel %vm485_vm1, %v486_v2, 0  ;;  %v1357_v6 = vld [vmem:[%s2012_s1] sm:$0xff]   ;;  %1220 = vmatprep.mubr.msk.bf16.mxu0 %vm387_vm2, %v1292_v4  ;;  %22 = vst.msk [vmem:[#allocation2 + $0x10] sm:$0xff] %vm19_vm3, %v1325_v8  ;;  %20 = vst.msk [vmem:[#allocation2] sm:$0xff] %vm19_vm3, %v1325_v8  ;;  %v1294_v9 = vld [vmem:[%s2013_s0 + $0x8] sm:$0xff]  }
   0x3   :  { %v1352_v5 = vand.u32 %v1290_v0, %v487_v3  ;;  %v1363_v7 = vld [vmem:[%s2013_s0 + $0x80] sm:$0xff]   ;;  %21 = vst.msk [vmem:[#allocation2 + $0x8] sm:$0xff] %vm19_vm3, %v1325_v8  ;;  %23 = vst.msk [vmem:[#allocation2 + $0x18] sm:$0xff] %vm19_vm3, %v1325_v8  ;;  %v1295_v10 = vld [vmem:[%s2013_s0 + $0x88] sm:$0xff]  }
   0x4   :  { %24 = vst.msk [vmem:[#allocation2 + $0x20] sm:$0xff] %vm19_vm3, %v1325_v8  ;;  %25 = vst.msk [vmem:[#allocation2 + $0x28] sm:$0xff] %vm19_vm3, %v1325_v8  ;;  %1252 = vmatprep.mubr.msk.bf16.mxu1 %vm387_vm2, %v1363_v7  ;;  %v1296_v11 = vld [vmem:[%s2013_s0 + $0x10] sm:$0xff]   ;;  %v1298_v13 = vld [vmem:[%s2013_s0 + $0x18] sm:$0xff]  }
   0x5   :  { %1216 = vmatprep.subr.bf16.mxu0 %v1352_v5  ;;  %1284 = vmatprep.subr.bf16.mxu1 %v1352_v5  ;;  %26 = vst.msk [vmem:[#allocation2 + $0x30] sm:$0xff] %vm19_vm3, %v1325_v8  ;;  %27 = vst.msk [vmem:[#allocation2 + $0x38] sm:$0xff] %vm19_vm3, %v1325_v8  ;;  %v1297_v12 = vld [vmem:[%s2013_s0 + $0x90] sm:$0xff]   ;;  %v1299_v14 = vld [vmem:[%s2013_s0 + $0x98] sm:$0xff]  }
   0x6   :  { %28 = vst.msk [vmem:[#allocation2 + $0x40] sm:$0xff] %vm19_vm3, %v1325_v8  ;;  %29 = vst.msk [vmem:[#allocation2 + $0x48] sm:$0xff] %vm19_vm3, %v1325_v8  ;;  %1217 = vmatpush3.bf16.msra.mxu0 %v1352_v5  ;;  %1286 = vmatpush3.bf16.msra.mxu1 %v1352_v5  ;;  %v1300_v15 = vld [vmem:[%s2013_s0 + $0x20] sm:$0xff]   ;;  %v1302_v17 = vld [vmem:[%s2013_s0 + $0x28] sm:$0xff]  }
   0x7   :  { %30 = vst.msk [vmem:[#allocation2 + $0x50] sm:$0xff] %vm19_vm3, %v1325_v8  ;;  %31 = vst.msk [vmem:[#allocation2 + $0x58] sm:$0xff] %vm19_vm3, %v1325_v8  ;;  %1218 = vmatprep.subr.bf16.mxu0 %v1357_v6  ;;  %1285 = vmatprep.subr.bf16.mxu1 %v1357_v6  ;;  %v1301_v16 = vld [vmem:[%s2013_s0 + $0xa0] sm:$0xff]   ;;  %v1303_v18 = vld [vmem:[%s2013_s0 + $0xa8] sm:$0xff]  }
   0x8   :  { %32 = vst.msk [vmem:[#allocation2 + $0x60] sm:$0xff] %vm19_vm3, %v1325_v8  ;;  %33 = vst.msk [vmem:[#allocation2 + $0x68] sm:$0xff] %vm19_vm3, %v1325_v8  ;;  %v1304_v19 = vld [vmem:[%s2013_s0 + $0x30] sm:$0xff]   ;;  %v1306_v21 = vld [vmem:[%s2013_s0 + $0x38] sm:$0xff]  }
   0x9   :  { %34 = vst.msk [vmem:[#allocation2 + $0x70] sm:$0xff] %vm19_vm3, %v1325_v8  ;;  %35 = vst.msk [vmem:[#allocation2 + $0x78] sm:$0xff] %vm19_vm3, %v1325_v8  ;;  %v1305_v20 = vld [vmem:[%s2013_s0 + $0xb0] sm:$0xff]   ;;  %v1307_v22 = vld [vmem:[%s2013_s0 + $0xb8] sm:$0xff]  }
   0xa   :  { %36 = vst.msk [vmem:[#allocation2 + $0x80] sm:$0xff] %vm19_vm3, %v1325_v8  ;;  %37 = vst.msk [vmem:[#allocation2 + $0x88] sm:$0xff] %vm19_vm3, %v1325_v8  ;;  %1219 = vmatpush3.bf16.msra.mxu0 %v1357_v6  ;;  %1287 = vmatpush3.bf16.msra.mxu1 %v1357_v6  ;;  %v1308_v23 = vld [vmem:[%s2013_s0 + $0x40] sm:$0xff]   ;;  %v1310_v25 = vld [vmem:[%s2013_s0 + $0x48] sm:$0xff]  }
   0xb   :  { %38 = vst.msk [vmem:[#allocation2 + $0x90] sm:$0xff] %vm19_vm3, %v1325_v8  ;;  %39 = vst.msk [vmem:[#allocation2 + $0x98] sm:$0xff] %vm19_vm3, %v1325_v8  ;;  %v1309_v24 = vld [vmem:[%s2013_s0 + $0xc0] sm:$0xff]   ;;  %v1311_v26 = vld [vmem:[%s2013_s0 + $0xc8] sm:$0xff]  }
   0xc   :  { %40 = vst.msk [vmem:[#allocation2 + $0xa0] sm:$0xff] %vm19_vm3, %v1325_v8  ;;  %41 = vst.msk [vmem:[#allocation2 + $0xa8] sm:$0xff] %vm19_vm3, %v1325_v8  ;;  %v1312_v27 = vld [vmem:[%s2013_s0 + $0x50] sm:$0xff]   ;;  %v1314_v29 = vld [vmem:[%s2013_s0 + $0x58] sm:$0xff]  }
   0xd   :  { %42 = vst.msk [vmem:[#allocation2 + $0xb0] sm:$0xff] %vm19_vm3, %v1325_v8  ;;  %43 = vst.msk [vmem:[#allocation2 + $0xb8] sm:$0xff] %vm19_vm3, %v1325_v8  ;;  %1221 = vmatmul.mubr.msk.bf16.vlgmr.msra.gmra.mxu0 %vm387_vm2, %v1294_v9  ;;  %1253 = vmatmul.mubr.msk.bf16.vlgmr.msra.gmra.mxu1 %vm387_vm2, %v1295_v10  ;;  %v1313_v28 = vld [vmem:[%s2013_s0 + $0xd0] sm:$0xff]   ;;  %v1315_v30 = vld [vmem:[%s2013_s0 + $0xd8] sm:$0xff]  }
   0xe   :  { %44 = vst.msk [vmem:[#allocation2 + $0xc0] sm:$0xff] %vm19_vm3, %v1325_v8  ;;  %45 = vst.msk [vmem:[#allocation2 + $0xc8] sm:$0xff] %vm19_vm3, %v1325_v8  ;;  %1224 = vmatprep.mubr.msk.bf16.mxu0 %vm387_vm2, %v1296_v11  ;;  %1256 = vmatprep.mubr.msk.bf16.mxu1 %vm387_vm2, %v1297_v12  ;;  %v1316_v31 = vld [vmem:[%s2013_s0 + $0x60] sm:$0xff]   ;;  %v1318_v33 = vld [vmem:[%s2013_s0 + $0x68] sm:$0xff]  }
   0xf   :  { %46 = vst.msk [vmem:[#allocation2 + $0xd0] sm:$0xff] %vm19_vm3, %v1325_v8  ;;  %47 = vst.msk [vmem:[#allocation2 + $0xd8] sm:$0xff] %vm19_vm3, %v1325_v8  ;;  %v1317_v32 = vld [vmem:[%s2013_s0 + $0xe0] sm:$0xff]   ;;  %v1319_v34 = vld [vmem:[%s2013_s0 + $0xe8] sm:$0xff]  }
  0x10   :  { %48 = vst.msk [vmem:[#allocation2 + $0xe0] sm:$0xff] %vm19_vm3, %v1325_v8  ;;  %49 = vst.msk [vmem:[#allocation2 + $0xe8] sm:$0xff] %vm19_vm3, %v1325_v8  ;;  %v1320_v35 = vld [vmem:[%s2013_s0 + $0x70] sm:$0xff]   ;;  %v1322_v37 = vld [vmem:[%s2013_s0 + $0x78] sm:$0xff]  }
  0x11   :  { %50 = vst.msk [vmem:[#allocation2 + $0xf0] sm:$0xff] %vm19_vm3, %v1325_v8  ;;  %51 = vst.msk [vmem:[#allocation2 + $0xf8] sm:$0xff] %vm19_vm3, %v1325_v8  ;;  %v1321_v36 = vld [vmem:[%s2013_s0 + $0xf0] sm:$0xff]   ;;  %v1323_v38 = vld [vmem:[%s2013_s0 + $0xf8] sm:$0xff]  }
  0x12   :  { %52 = vst.msk [vmem:[#allocation2 + $0x100] sm:$0xff] %vm19_vm3, %v1325_v8  ;;  %53 = vst.msk [vmem:[#allocation2 + $0x108] sm:$0xff] %vm19_vm3, %v1325_v8  ;;  %v86_v39 = vld [vmem:[#allocation2 + $0x10] sm:$0xff]  ;;  %v84_v43 = vld [vmem:[#allocation2] sm:$0xff] }
  0x13   :  { %54 = vst.msk [vmem:[#allocation2 + $0x110] sm:$0xff] %vm19_vm3, %v1325_v8  ;;  %55 = vst.msk [vmem:[#allocation2 + $0x118] sm:$0xff] %vm19_vm3, %v1325_v8  ;;  %v87_v49 = vld [vmem:[#allocation2 + $0x18] sm:$0xff]  ;;  %v85_v55 = vld [vmem:[#allocation2 + $0x8] sm:$0xff] }
  0x14   :  { %56 = vst.msk [vmem:[#allocation2 + $0x120] sm:$0xff] %vm19_vm3, %v1325_v8  ;;  %57 = vst.msk [vmem:[#allocation2 + $0x128] sm:$0xff] %vm19_vm3, %v1325_v8  ;;  %v90_v61 = vld [vmem:[#allocation2 + $0x30] sm:$0xff]  ;;  %v1632_v1 = vld [vmem:[%s2014_s2] ss:$0 sm:$0xff] }
  0x15   :  { %58 = vst.msk [vmem:[#allocation2 + $0x130] sm:$0xff] %vm19_vm3, %v1325_v8  ;;  %59 = vst.msk [vmem:[#allocation2 + $0x138] sm:$0xff] %vm19_vm3, %v1325_v8  ;;  %1225 = vmatmul.mubr.msk.bf16.gmra.mxu0 %vm387_vm2, %v1298_v13  ;;  %1257 = vmatmul.mubr.msk.bf16.gmra.mxu1 %vm387_vm2, %v1299_v14  ;;  %v88_v4 = vld [vmem:[#allocation2 + $0x20] sm:$0xff] }
  0x16   :  { %60 = vst.msk [vmem:[#allocation2 + $0x140] sm:$0xff] %vm19_vm3, %v1325_v8  ;;  %61 = vst.msk [vmem:[#allocation2 + $0x148] sm:$0xff] %vm19_vm3, %v1325_v8  ;;  %1228 = vmatprep.mubr.msk.bf16.mxu0 %vm387_vm2, %v1300_v15  ;;  %1260 = vmatprep.mubr.msk.bf16.mxu1 %vm387_vm2, %v1301_v16 }
  0x17   :  { %62 = vst.msk [vmem:[#allocation2 + $0x150] sm:$0xff] %vm19_vm3, %v1325_v8  ;;  %63 = vst.msk [vmem:[#allocation2 + $0x158] sm:$0xff] %vm19_vm3, %v1325_v8 }
  0x18   :  { %64 = vst.msk [vmem:[#allocation2 + $0x160] sm:$0xff] %vm19_vm3, %v1325_v8  ;;  %65 = vst.msk [vmem:[#allocation2 + $0x168] sm:$0xff] %vm19_vm3, %v1325_v8 }
  0x19   :  { %66 = vst.msk [vmem:[#allocation2 + $0x170] sm:$0xff] %vm19_vm3, %v1325_v8  ;;  %67 = vst.msk [vmem:[#allocation2 + $0x178] sm:$0xff] %vm19_vm3, %v1325_v8  ;;  %v116_v44 = vld [vmem:[#allocation2 + $0x100] sm:$0xff]  ;;  %v117_v56 = vld [vmem:[#allocation2 + $0x108] sm:$0xff] }
  0x1a   :  { %68 = vst.msk [vmem:[#allocation2 + $0x180] sm:$0xff] %vm19_vm3, %v1325_v8  ;;  %69 = vst.msk [vmem:[#allocation2 + $0x188] sm:$0xff] %vm19_vm3, %v1325_v8  ;;  %v118_v40 = vld [vmem:[#allocation2 + $0x110] sm:$0xff]  ;;  %v119_v50 = vld [vmem:[#allocation2 + $0x118] sm:$0xff] }
  0x1b   :  { %70 = vst.msk [vmem:[#allocation2 + $0x190] sm:$0xff] %vm19_vm3, %v1325_v8  ;;  %71 = vst.msk [vmem:[#allocation2 + $0x198] sm:$0xff] %vm19_vm3, %v1325_v8  ;;  %v120_v5 = vld [vmem:[#allocation2 + $0x120] sm:$0xff] }
  0x1c   :  { %72 = vst.msk [vmem:[#allocation2 + $0x1a0] sm:$0xff] %vm19_vm3, %v1325_v8  ;;  %73 = vst.msk [vmem:[#allocation2 + $0x1a8] sm:$0xff] %vm19_vm3, %v1325_v8  ;;  %v122_v62 = vld [vmem:[#allocation2 + $0x130] sm:$0xff]  ;;  %v123_v13 = vld [vmem:[#allocation2 + $0x138] sm:$0xff] }
  0x1d   :  { %74 = vst.msk [vmem:[#allocation2 + $0x1b0] sm:$0xff] %vm19_vm3, %v1325_v8  ;;  %75 = vst.msk [vmem:[#allocation2 + $0x1b8] sm:$0xff] %vm19_vm3, %v1325_v8  ;;  %1229 = vmatmul.mubr.msk.bf16.gmra.mxu0 %vm387_vm2, %v1302_v17  ;;  %1261 = vmatmul.mubr.msk.bf16.gmra.mxu1 %vm387_vm2, %v1303_v18  ;;  %v89_v18 = vld [vmem:[#allocation2 + $0x28] sm:$0xff] }
  0x1e   :  { %76 = vst.msk [vmem:[#allocation2 + $0x1c0] sm:$0xff] %vm19_vm3, %v1325_v8  ;;  %77 = vst.msk [vmem:[#allocation2 + $0x1c8] sm:$0xff] %vm19_vm3, %v1325_v8  ;;  %1232 = vmatprep.mubr.msk.bf16.mxu0 %vm387_vm2, %v1304_v19  ;;  %1264 = vmatprep.mubr.msk.bf16.mxu1 %vm387_vm2, %v1305_v20 }
  0x1f   :  { %78 = vst.msk [vmem:[#allocation2 + $0x1d0] sm:$0xff] %vm19_vm3, %v1325_v8  ;;  %79 = vst.msk [vmem:[#allocation2 + $0x1d8] sm:$0xff] %vm19_vm3, %v1325_v8 }
  0x20   :  { %80 = vst.msk [vmem:[#allocation2 + $0x1e0] sm:$0xff] %vm19_vm3, %v1325_v8  ;;  %81 = vst.msk [vmem:[#allocation2 + $0x1e8] sm:$0xff] %vm19_vm3, %v1325_v8 }
  0x21   :  { %82 = vst.msk [vmem:[#allocation2 + $0x1f0] sm:$0xff] %vm19_vm3, %v1325_v8  ;;  %83 = vst.msk [vmem:[#allocation2 + $0x1f8] sm:$0xff] %vm19_vm3, %v1325_v8  ;;  %v91_v8 = vld [vmem:[#allocation2 + $0x38] sm:$0xff] }
  0x25   :  { %1233 = vmatmul.mubr.msk.bf16.gmra.mxu0 %vm387_vm2, %v1306_v21  ;;  %1265 = vmatmul.mubr.msk.bf16.gmra.mxu1 %vm387_vm2, %v1307_v22 }
  0x26   :  { %1236 = vmatprep.mubr.msk.bf16.mxu0 %vm387_vm2, %v1308_v23  ;;  %1268 = vmatprep.mubr.msk.bf16.mxu1 %vm387_vm2, %v1309_v24  ;;  %v121_v23 = vld [vmem:[#allocation2 + $0x128] sm:$0xff] }
  0x2d   :  { %1237 = vmatmul.mubr.msk.bf16.gmra.mxu0 %vm387_vm2, %v1310_v25  ;;  %1269 = vmatmul.mubr.msk.bf16.gmra.mxu1 %vm387_vm2, %v1311_v26 }
  0x2e   :  { %1240 = vmatprep.mubr.msk.bf16.mxu0 %vm387_vm2, %v1312_v27  ;;  %1272 = vmatprep.mubr.msk.bf16.mxu1 %vm387_vm2, %v1313_v28  ;;  %v94_v28 = vld [vmem:[#allocation2 + $0x50] sm:$0xff] }
  0x35   :  { %1241 = vmatmul.mubr.msk.bf16.gmra.mxu0 %vm387_vm2, %v1314_v29  ;;  %1273 = vmatmul.mubr.msk.bf16.gmra.mxu1 %vm387_vm2, %v1315_v30 }
  0x36   :  { %1244 = vmatprep.mubr.msk.bf16.mxu0 %vm387_vm2, %v1316_v31  ;;  %1276 = vmatprep.mubr.msk.bf16.mxu1 %vm387_vm2, %v1317_v32 }
  0x3d   :  { %1245 = vmatmul.mubr.msk.bf16.gmra.mxu0 %vm387_vm2, %v1318_v33  ;;  %1277 = vmatmul.mubr.msk.bf16.gmra.mxu1 %vm387_vm2, %v1319_v34  ;;  %v126_v33 = vld [vmem:[#allocation2 + $0x150] sm:$0xff] }
  0x3e   :  { %1248 = vmatprep.mubr.msk.bf16.mxu0 %vm387_vm2, %v1320_v35  ;;  %1280 = vmatprep.mubr.msk.bf16.mxu1 %vm387_vm2, %v1321_v36 }
  0x45   :  { %1249 = vmatmul.mubr.msk.bf16.gmra.mxu0 %vm387_vm2, %v1322_v37  ;;  %1281 = vmatmul.mubr.msk.bf16.gmra.mxu1 %vm387_vm2, %v1323_v38  ;;  %v92_v38 = vld [vmem:[#allocation2 + $0x40] sm:$0xff] }
  0xcd   :  { %v1222_v41 = vpop.f32.mrf.mxu0  ;;  %v1254_v42 = vpop.f32.mrf.mxu1 }
  0xce   :  { %v782_v45 = vadd.f32 %v1222_v41, %v86_v39  ;;  %v814_v46 = vadd.f32 %v1254_v42, %v118_v40 }
  0xcf   :  { %v525_v47 = vpop.f32.mrf.mxu0  ;;  %v653_v48 = vpop.f32.mrf.mxu1 }
  0xd0   :  { %847 = vst.msk [vmem:[#allocation2 + $0x10] sm:$0xff] %vm19_vm3, %v782_v45  ;;  %879 = vst.msk [vmem:[#allocation2 + $0x110] sm:$0xff] %vm19_vm3, %v814_v46  ;;  %v780_v51 = vadd.f32 %v525_v47, %v84_v43  ;;  %v812_v52 = vadd.f32 %v653_v48, %v116_v44  ;;  %v124_v43 = vld [vmem:[#allocation2 + $0x140] sm:$0xff]  ;;  %v95_v48 = vld [vmem:[#allocation2 + $0x58] sm:$0xff] }
  0xd1   :  { %v1223_v53 = vpop.f32.mrf.mxu0  ;;  %v1255_v54 = vpop.f32.mrf.mxu1 }
  0xd2   :  { %845 = vst.msk [vmem:[#allocation2] sm:$0xff] %vm19_vm3, %v780_v51  ;;  %877 = vst.msk [vmem:[#allocation2 + $0x100] sm:$0xff] %vm19_vm3, %v812_v52  ;;  %v783_v57 = vadd.f32 %v1223_v53, %v87_v49  ;;  %v815_v58 = vadd.f32 %v1255_v54, %v119_v50  ;;  %v127_v53 = vld [vmem:[#allocation2 + $0x158] sm:$0xff] }
  0xd3   :  { %v528_v59 = vpop.f32.mrf.mxu0  ;;  %v656_v60 = vpop.f32.mrf.mxu1 }
  0xd4   :  { %848 = vst.msk [vmem:[#allocation2 + $0x18] sm:$0xff] %vm19_vm3, %v783_v57  ;;  %880 = vst.msk [vmem:[#allocation2 + $0x118] sm:$0xff] %vm19_vm3, %v815_v58  ;;  %v781_v63 = vadd.f32 %v528_v59, %v85_v55  ;;  %v813_v0 = vadd.f32 %v656_v60, %v117_v56  ;;  %v93_v58 = vld [vmem:[#allocation2 + $0x48] sm:$0xff] }
  0xd5   :  { %v1226_v2 = vpop.f32.mrf.mxu0  ;;  %v1258_v3 = vpop.f32.mrf.mxu1 }
  0xd6   :  { %846 = vst.msk [vmem:[#allocation2 + $0x8] sm:$0xff] %vm19_vm3, %v781_v63  ;;  %878 = vst.msk [vmem:[#allocation2 + $0x108] sm:$0xff] %vm19_vm3, %v813_v0  ;;  %v786_v6 = vadd.f32 %v1226_v2, %v90_v61  ;;  %v818_v7 = vadd.f32 %v1258_v3, %v122_v62  ;;  %v125_v63 = vld [vmem:[#allocation2 + $0x148] sm:$0xff] }
  0xd7   :  { %v914_v9 = vld [vmem:[#allocation2 + $0x10] sm:$0xff]  ;;  %v541_v11 = vpop.f32.mrf.mxu0  ;;  %v669_v12 = vpop.f32.mrf.mxu1 }
  0xd8   :  { %v946_v10 = vld [vmem:[#allocation2 + $0x110] sm:$0xff]  ;;  %v985_v14 = vadd.f32 %v1632_v1, %v914_v9  ;;  %851 = vst.msk [vmem:[#allocation2 + $0x30] sm:$0xff] %vm19_vm3, %v786_v6  ;;  %883 = vst.msk [vmem:[#allocation2 + $0x130] sm:$0xff] %vm19_vm3, %v818_v7  ;;  %v784_v16 = vadd.f32 %v541_v11, %v88_v4  ;;  %v816_v17 = vadd.f32 %v669_v12, %v120_v5 }
  0xd9   :  { %v1017_v15 = vadd.f32 %v1632_v1, %v946_v10  ;;  %v912_v19 = vld [vmem:[#allocation2] sm:$0xff]  ;;  %v1227_v21 = vpop.f32.mrf.mxu0  ;;  %v1259_v22 = vpop.f32.mrf.mxu1  ;;  %v98_v5 = vld [vmem:[#allocation2 + $0x70] sm:$0xff] }
  0xda   :  { %v944_v20 = vld [vmem:[#allocation2 + $0x100] sm:$0xff]  ;;  %1049 = vst.msk [vmem:[%s2015_s3 + $0x10] sm:$0xff] %vm19_vm3, %v985_v14  ;;  %v983_v24 = vadd.f32 %v1632_v1, %v912_v19  ;;  %849 = vst.msk [vmem:[#allocation2 + $0x20] sm:$0xff] %vm19_vm3, %v784_v16  ;;  %v787_v26 = vadd.f32 %v1227_v21, %v91_v8  ;;  %v819_v27 = vadd.f32 %v1259_v22, %v123_v13  ;;  %v130_v10 = vld [vmem:[#allocation2 + $0x170] sm:$0xff] }
  0xdb   :  { %1081 = vst.msk [vmem:[%s2015_s3 + $0x110] sm:$0xff] %vm19_vm3, %v1017_v15  ;;  %v1015_v25 = vadd.f32 %v1632_v1, %v944_v20  ;;  %881 = vst.msk [vmem:[#allocation2 + $0x120] sm:$0xff] %vm19_vm3, %v816_v17  ;;  %v915_v29 = vld [vmem:[#allocation2 + $0x18] sm:$0xff]  ;;  %v544_v31 = vpop.f32.mrf.mxu0  ;;  %v672_v32 = vpop.f32.mrf.mxu1  ;;  %v96_v15 = vld [vmem:[#allocation2 + $0x60] sm:$0xff] }
  0xdc   :  { %v947_v30 = vld [vmem:[#allocation2 + $0x118] sm:$0xff]  ;;  %1047 = vst.msk [vmem:[%s2015_s3] sm:$0xff] %vm19_vm3, %v983_v24  ;;  %v986_v34 = vadd.f32 %v1632_v1, %v915_v29  ;;  %852 = vst.msk [vmem:[#allocation2 + $0x38] sm:$0xff] %vm19_vm3, %v787_v26  ;;  %v785_v36 = vadd.f32 %v544_v31, %v89_v18  ;;  %v817_v37 = vadd.f32 %v672_v32, %v121_v23  ;;  %v128_v20 = vld [vmem:[#allocation2 + $0x160] sm:$0xff] }
  0xdd   :  { %1079 = vst.msk [vmem:[%s2015_s3 + $0x100] sm:$0xff] %vm19_vm3, %v1015_v25  ;;  %v1018_v35 = vadd.f32 %v1632_v1, %v947_v30  ;;  %884 = vst.msk [vmem:[#allocation2 + $0x138] sm:$0xff] %vm19_vm3, %v819_v27  ;;  %v913_v39 = vld [vmem:[#allocation2 + $0x8] sm:$0xff]  ;;  %v1230_v41 = vpop.f32.mrf.mxu0  ;;  %v1262_v42 = vpop.f32.mrf.mxu1  ;;  %v99_v25 = vld [vmem:[#allocation2 + $0x78] sm:$0xff] }
  0xde   :  { %v945_v40 = vld [vmem:[#allocation2 + $0x108] sm:$0xff]  ;;  %1050 = vst.msk [vmem:[%s2015_s3 + $0x18] sm:$0xff] %vm19_vm3, %v986_v34  ;;  %v984_v44 = vadd.f32 %v1632_v1, %v913_v39  ;;  %850 = vst.msk [vmem:[#allocation2 + $0x28] sm:$0xff] %vm19_vm3, %v785_v36  ;;  %v790_v46 = vadd.f32 %v1230_v41, %v94_v28  ;;  %v822_v47 = vadd.f32 %v1262_v42, %v126_v33  ;;  %v131_v30 = vld [vmem:[#allocation2 + $0x178] sm:$0xff] }
  0xdf   :  { %1082 = vst.msk [vmem:[%s2015_s3 + $0x118] sm:$0xff] %vm19_vm3, %v1018_v35  ;;  %v1016_v45 = vadd.f32 %v1632_v1, %v945_v40  ;;  %882 = vst.msk [vmem:[#allocation2 + $0x128] sm:$0xff] %vm19_vm3, %v817_v37  ;;  %v918_v49 = vld [vmem:[#allocation2 + $0x30] sm:$0xff]  ;;  %v557_v51 = vpop.f32.mrf.mxu0  ;;  %v685_v52 = vpop.f32.mrf.mxu1  ;;  %v97_v35 = vld [vmem:[#allocation2 + $0x68] sm:$0xff] }
  0xe0   :  { %v950_v50 = vld [vmem:[#allocation2 + $0x130] sm:$0xff]  ;;  %1048 = vst.msk [vmem:[%s2015_s3 + $0x8] sm:$0xff] %vm19_vm3, %v984_v44  ;;  %v989_v54 = vadd.f32 %v1632_v1, %v918_v49  ;;  %855 = vst.msk [vmem:[#allocation2 + $0x50] sm:$0xff] %vm19_vm3, %v790_v46  ;;  %v788_v56 = vadd.f32 %v557_v51, %v92_v38  ;;  %v820_v57 = vadd.f32 %v685_v52, %v124_v43  ;;  %v129_v40 = vld [vmem:[#allocation2 + $0x168] sm:$0xff] }
  0xe1   :  { %1080 = vst.msk [vmem:[%s2015_s3 + $0x108] sm:$0xff] %vm19_vm3, %v1016_v45  ;;  %v1021_v55 = vadd.f32 %v1632_v1, %v950_v50  ;;  %887 = vst.msk [vmem:[#allocation2 + $0x150] sm:$0xff] %vm19_vm3, %v822_v47  ;;  %v916_v59 = vld [vmem:[#allocation2 + $0x20] sm:$0xff]  ;;  %v1231_v61 = vpop.f32.mrf.mxu0  ;;  %v1263_v62 = vpop.f32.mrf.mxu1  ;;  %v102_v45 = vld [vmem:[#allocation2 + $0x90] sm:$0xff] }
  0xe2   :  { %v948_v60 = vld [vmem:[#allocation2 + $0x120] sm:$0xff]  ;;  %1053 = vst.msk [vmem:[%s2015_s3 + $0x30] sm:$0xff] %vm19_vm3, %v989_v54  ;;  %v987_v0 = vadd.f32 %v1632_v1, %v916_v59  ;;  %853 = vst.msk [vmem:[#allocation2 + $0x40] sm:$0xff] %vm19_vm3, %v788_v56  ;;  %v791_v3 = vadd.f32 %v1231_v61, %v95_v48  ;;  %v823_v4 = vadd.f32 %v1263_v62, %v127_v53  ;;  %v134_v50 = vld [vmem:[#allocation2 + $0x190] sm:$0xff] }
  0xe3   :  { %1085 = vst.msk [vmem:[%s2015_s3 + $0x130] sm:$0xff] %vm19_vm3, %v1021_v55  ;;  %v1019_v2 = vadd.f32 %v1632_v1, %v948_v60  ;;  %885 = vst.msk [vmem:[#allocation2 + $0x140] sm:$0xff] %vm19_vm3, %v820_v57  ;;  %v919_v6 = vld [vmem:[#allocation2 + $0x38] sm:$0xff]  ;;  %v560_v8 = vpop.f32.mrf.mxu0  ;;  %v688_v9 = vpop.f32.mrf.mxu1  ;;  %v100_v55 = vld [vmem:[#allocation2 + $0x80] sm:$0xff] }
  0xe4   :  { %v951_v7 = vld [vmem:[#allocation2 + $0x138] sm:$0xff]  ;;  %1051 = vst.msk [vmem:[%s2015_s3 + $0x20] sm:$0xff] %vm19_vm3, %v987_v0  ;;  %v990_v11 = vadd.f32 %v1632_v1, %v919_v6  ;;  %856 = vst.msk [vmem:[#allocation2 + $0x58] sm:$0xff] %vm19_vm3, %v791_v3  ;;  %v789_v13 = vadd.f32 %v560_v8, %v93_v58  ;;  %v821_v14 = vadd.f32 %v688_v9, %v125_v63  ;;  %v132_v60 = vld [vmem:[#allocation2 + $0x180] sm:$0xff] }
  0xe5   :  { %1083 = vst.msk [vmem:[%s2015_s3 + $0x120] sm:$0xff] %vm19_vm3, %v1019_v2  ;;  %v1022_v12 = vadd.f32 %v1632_v1, %v951_v7  ;;  %888 = vst.msk [vmem:[#allocation2 + $0x158] sm:$0xff] %vm19_vm3, %v823_v4  ;;  %v917_v16 = vld [vmem:[#allocation2 + $0x28] sm:$0xff]  ;;  %v1234_v18 = vpop.f32.mrf.mxu0  ;;  %v1266_v19 = vpop.f32.mrf.mxu1  ;;  %v103_v2 = vld [vmem:[#allocation2 + $0x98] sm:$0xff] }
  0xe6   :  { %v949_v17 = vld [vmem:[#allocation2 + $0x128] sm:$0xff]  ;;  %1054 = vst.msk [vmem:[%s2015_s3 + $0x38] sm:$0xff] %vm19_vm3, %v990_v11  ;;  %v988_v21 = vadd.f32 %v1632_v1, %v917_v16  ;;  %854 = vst.msk [vmem:[#allocation2 + $0x48] sm:$0xff] %vm19_vm3, %v789_v13  ;;  %v794_v23 = vadd.f32 %v1234_v18, %v98_v5  ;;  %v826_v24 = vadd.f32 %v1266_v19, %v130_v10  ;;  %v135_v7 = vld [vmem:[#allocation2 + $0x198] sm:$0xff] }
  0xe7   :  { %1086 = vst.msk [vmem:[%s2015_s3 + $0x138] sm:$0xff] %vm19_vm3, %v1022_v12  ;;  %v1020_v22 = vadd.f32 %v1632_v1, %v949_v17  ;;  %886 = vst.msk [vmem:[#allocation2 + $0x148] sm:$0xff] %vm19_vm3, %v821_v14  ;;  %v922_v26 = vld [vmem:[#allocation2 + $0x50] sm:$0xff]  ;;  %v573_v28 = vpop.f32.mrf.mxu0  ;;  %v701_v29 = vpop.f32.mrf.mxu1  ;;  %v101_v12 = vld [vmem:[#allocation2 + $0x88] sm:$0xff] }
  0xe8   :  { %v954_v27 = vld [vmem:[#allocation2 + $0x150] sm:$0xff]  ;;  %1052 = vst.msk [vmem:[%s2015_s3 + $0x28] sm:$0xff] %vm19_vm3, %v988_v21  ;;  %v993_v31 = vadd.f32 %v1632_v1, %v922_v26  ;;  %859 = vst.msk [vmem:[#allocation2 + $0x70] sm:$0xff] %vm19_vm3, %v794_v23  ;;  %v792_v33 = vadd.f32 %v573_v28, %v96_v15  ;;  %v824_v34 = vadd.f32 %v701_v29, %v128_v20  ;;  %v133_v17 = vld [vmem:[#allocation2 + $0x188] sm:$0xff] }
  0xe9   :  { %1084 = vst.msk [vmem:[%s2015_s3 + $0x128] sm:$0xff] %vm19_vm3, %v1020_v22  ;;  %v1025_v32 = vadd.f32 %v1632_v1, %v954_v27  ;;  %891 = vst.msk [vmem:[#allocation2 + $0x170] sm:$0xff] %vm19_vm3, %v826_v24  ;;  %v920_v36 = vld [vmem:[#allocation2 + $0x40] sm:$0xff]  ;;  %v1235_v38 = vpop.f32.mrf.mxu0  ;;  %v1267_v39 = vpop.f32.mrf.mxu1  ;;  %v106_v22 = vld [vmem:[#allocation2 + $0xb0] sm:$0xff] }
  0xea   :  { %v952_v37 = vld [vmem:[#allocation2 + $0x140] sm:$0xff]  ;;  %1057 = vst.msk [vmem:[%s2015_s3 + $0x50] sm:$0xff] %vm19_vm3, %v993_v31  ;;  %v991_v41 = vadd.f32 %v1632_v1, %v920_v36  ;;  %857 = vst.msk [vmem:[#allocation2 + $0x60] sm:$0xff] %vm19_vm3, %v792_v33  ;;  %v795_v43 = vadd.f32 %v1235_v38, %v99_v25  ;;  %v827_v44 = vadd.f32 %v1267_v39, %v131_v30  ;;  %v138_v27 = vld [vmem:[#allocation2 + $0x1b0] sm:$0xff] }
  0xeb   :  { %1089 = vst.msk [vmem:[%s2015_s3 + $0x150] sm:$0xff] %vm19_vm3, %v1025_v32  ;;  %v1023_v42 = vadd.f32 %v1632_v1, %v952_v37  ;;  %889 = vst.msk [vmem:[#allocation2 + $0x160] sm:$0xff] %vm19_vm3, %v824_v34  ;;  %v923_v46 = vld [vmem:[#allocation2 + $0x58] sm:$0xff]  ;;  %v576_v48 = vpop.f32.mrf.mxu0  ;;  %v704_v49 = vpop.f32.mrf.mxu1  ;;  %v104_v32 = vld [vmem:[#allocation2 + $0xa0] sm:$0xff] }
  0xec   :  { %v955_v47 = vld [vmem:[#allocation2 + $0x158] sm:$0xff]  ;;  %1055 = vst.msk [vmem:[%s2015_s3 + $0x40] sm:$0xff] %vm19_vm3, %v991_v41  ;;  %v994_v51 = vadd.f32 %v1632_v1, %v923_v46  ;;  %860 = vst.msk [vmem:[#allocation2 + $0x78] sm:$0xff] %vm19_vm3, %v795_v43  ;;  %v793_v53 = vadd.f32 %v576_v48, %v97_v35  ;;  %v825_v54 = vadd.f32 %v704_v49, %v129_v40  ;;  %v136_v37 = vld [vmem:[#allocation2 + $0x1a0] sm:$0xff] }
  0xed   :  { %1087 = vst.msk [vmem:[%s2015_s3 + $0x140] sm:$0xff] %vm19_vm3, %v1023_v42  ;;  %v1026_v52 = vadd.f32 %v1632_v1, %v955_v47  ;;  %892 = vst.msk [vmem:[#allocation2 + $0x178] sm:$0xff] %vm19_vm3, %v827_v44  ;;  %v921_v56 = vld [vmem:[#allocation2 + $0x48] sm:$0xff]  ;;  %v1238_v58 = vpop.f32.mrf.mxu0  ;;  %v1270_v59 = vpop.f32.mrf.mxu1  ;;  %v107_v42 = vld [vmem:[#allocation2 + $0xb8] sm:$0xff] }
  0xee   :  { %v953_v57 = vld [vmem:[#allocation2 + $0x148] sm:$0xff]  ;;  %1058 = vst.msk [vmem:[%s2015_s3 + $0x58] sm:$0xff] %vm19_vm3, %v994_v51  ;;  %v992_v61 = vadd.f32 %v1632_v1, %v921_v56  ;;  %858 = vst.msk [vmem:[#allocation2 + $0x68] sm:$0xff] %vm19_vm3, %v793_v53  ;;  %v798_v63 = vadd.f32 %v1238_v58, %v102_v45  ;;  %v830_v0 = vadd.f32 %v1270_v59, %v134_v50  ;;  %v139_v47 = vld [vmem:[#allocation2 + $0x1b8] sm:$0xff] }
  0xef   :  { %1090 = vst.msk [vmem:[%s2015_s3 + $0x158] sm:$0xff] %vm19_vm3, %v1026_v52  ;;  %v1024_v62 = vadd.f32 %v1632_v1, %v953_v57  ;;  %890 = vst.msk [vmem:[#allocation2 + $0x168] sm:$0xff] %vm19_vm3, %v825_v54  ;;  %v926_v3 = vld [vmem:[#allocation2 + $0x70] sm:$0xff]  ;;  %v589_v5 = vpop.f32.mrf.mxu0  ;;  %v717_v6 = vpop.f32.mrf.mxu1  ;;  %v105_v52 = vld [vmem:[#allocation2 + $0xa8] sm:$0xff] }
  0xf0   :  { %v958_v4 = vld [vmem:[#allocation2 + $0x170] sm:$0xff]  ;;  %1056 = vst.msk [vmem:[%s2015_s3 + $0x48] sm:$0xff] %vm19_vm3, %v992_v61  ;;  %v997_v8 = vadd.f32 %v1632_v1, %v926_v3  ;;  %863 = vst.msk [vmem:[#allocation2 + $0x90] sm:$0xff] %vm19_vm3, %v798_v63  ;;  %v796_v10 = vadd.f32 %v589_v5, %v100_v55  ;;  %v828_v11 = vadd.f32 %v717_v6, %v132_v60  ;;  %v137_v57 = vld [vmem:[#allocation2 + $0x1a8] sm:$0xff] }
  0xf1   :  { %1088 = vst.msk [vmem:[%s2015_s3 + $0x148] sm:$0xff] %vm19_vm3, %v1024_v62  ;;  %v1029_v9 = vadd.f32 %v1632_v1, %v958_v4  ;;  %895 = vst.msk [vmem:[#allocation2 + $0x190] sm:$0xff] %vm19_vm3, %v830_v0  ;;  %v924_v13 = vld [vmem:[#allocation2 + $0x60] sm:$0xff]  ;;  %v1239_v15 = vpop.f32.mrf.mxu0  ;;  %v1271_v16 = vpop.f32.mrf.mxu1  ;;  %v110_v62 = vld [vmem:[#allocation2 + $0xd0] sm:$0xff] }
  0xf2   :  { %v956_v14 = vld [vmem:[#allocation2 + $0x160] sm:$0xff]  ;;  %1061 = vst.msk [vmem:[%s2015_s3 + $0x70] sm:$0xff] %vm19_vm3, %v997_v8  ;;  %v995_v18 = vadd.f32 %v1632_v1, %v924_v13  ;;  %861 = vst.msk [vmem:[#allocation2 + $0x80] sm:$0xff] %vm19_vm3, %v796_v10  ;;  %v799_v20 = vadd.f32 %v1239_v15, %v103_v2  ;;  %v831_v21 = vadd.f32 %v1271_v16, %v135_v7  ;;  %v142_v4 = vld [vmem:[#allocation2 + $0x1d0] sm:$0xff] }
  0xf3   :  { %1093 = vst.msk [vmem:[%s2015_s3 + $0x170] sm:$0xff] %vm19_vm3, %v1029_v9  ;;  %v1027_v19 = vadd.f32 %v1632_v1, %v956_v14  ;;  %893 = vst.msk [vmem:[#allocation2 + $0x180] sm:$0xff] %vm19_vm3, %v828_v11  ;;  %v927_v23 = vld [vmem:[#allocation2 + $0x78] sm:$0xff]  ;;  %v592_v25 = vpop.f32.mrf.mxu0  ;;  %v720_v26 = vpop.f32.mrf.mxu1  ;;  %v108_v9 = vld [vmem:[#allocation2 + $0xc0] sm:$0xff] }
  0xf4   :  { %v959_v24 = vld [vmem:[#allocation2 + $0x178] sm:$0xff]  ;;  %1059 = vst.msk [vmem:[%s2015_s3 + $0x60] sm:$0xff] %vm19_vm3, %v995_v18  ;;  %v998_v28 = vadd.f32 %v1632_v1, %v927_v23  ;;  %864 = vst.msk [vmem:[#allocation2 + $0x98] sm:$0xff] %vm19_vm3, %v799_v20  ;;  %v797_v30 = vadd.f32 %v592_v25, %v101_v12  ;;  %v829_v31 = vadd.f32 %v720_v26, %v133_v17  ;;  %v140_v14 = vld [vmem:[#allocation2 + $0x1c0] sm:$0xff] }
  0xf5   :  { %1091 = vst.msk [vmem:[%s2015_s3 + $0x160] sm:$0xff] %vm19_vm3, %v1027_v19  ;;  %v1030_v29 = vadd.f32 %v1632_v1, %v959_v24  ;;  %896 = vst.msk [vmem:[#allocation2 + $0x198] sm:$0xff] %vm19_vm3, %v831_v21  ;;  %v925_v33 = vld [vmem:[#allocation2 + $0x68] sm:$0xff]  ;;  %v1242_v35 = vpop.f32.mrf.mxu0  ;;  %v1274_v36 = vpop.f32.mrf.mxu1  ;;  %v111_v19 = vld [vmem:[#allocation2 + $0xd8] sm:$0xff] }
  0xf6   :  { %v957_v34 = vld [vmem:[#allocation2 + $0x168] sm:$0xff]  ;;  %1062 = vst.msk [vmem:[%s2015_s3 + $0x78] sm:$0xff] %vm19_vm3, %v998_v28  ;;  %v996_v38 = vadd.f32 %v1632_v1, %v925_v33  ;;  %862 = vst.msk [vmem:[#allocation2 + $0x88] sm:$0xff] %vm19_vm3, %v797_v30  ;;  %v802_v40 = vadd.f32 %v1242_v35, %v106_v22  ;;  %v834_v41 = vadd.f32 %v1274_v36, %v138_v27  ;;  %v143_v24 = vld [vmem:[#allocation2 + $0x1d8] sm:$0xff] }
  0xf7   :  { %1094 = vst.msk [vmem:[%s2015_s3 + $0x178] sm:$0xff] %vm19_vm3, %v1030_v29  ;;  %v1028_v39 = vadd.f32 %v1632_v1, %v957_v34  ;;  %894 = vst.msk [vmem:[#allocation2 + $0x188] sm:$0xff] %vm19_vm3, %v829_v31  ;;  %v930_v43 = vld [vmem:[#allocation2 + $0x90] sm:$0xff]  ;;  %v605_v45 = vpop.f32.mrf.mxu0  ;;  %v733_v46 = vpop.f32.mrf.mxu1  ;;  %v109_v29 = vld [vmem:[#allocation2 + $0xc8] sm:$0xff] }
  0xf8   :  { %v962_v44 = vld [vmem:[#allocation2 + $0x190] sm:$0xff]  ;;  %1060 = vst.msk [vmem:[%s2015_s3 + $0x68] sm:$0xff] %vm19_vm3, %v996_v38  ;;  %v1001_v48 = vadd.f32 %v1632_v1, %v930_v43  ;;  %867 = vst.msk [vmem:[#allocation2 + $0xb0] sm:$0xff] %vm19_vm3, %v802_v40  ;;  %v800_v50 = vadd.f32 %v605_v45, %v104_v32  ;;  %v832_v51 = vadd.f32 %v733_v46, %v136_v37  ;;  %v141_v34 = vld [vmem:[#allocation2 + $0x1c8] sm:$0xff] }
  0xf9   :  { %1092 = vst.msk [vmem:[%s2015_s3 + $0x168] sm:$0xff] %vm19_vm3, %v1028_v39  ;;  %v1033_v49 = vadd.f32 %v1632_v1, %v962_v44  ;;  %899 = vst.msk [vmem:[#allocation2 + $0x1b0] sm:$0xff] %vm19_vm3, %v834_v41  ;;  %v928_v53 = vld [vmem:[#allocation2 + $0x80] sm:$0xff]  ;;  %v1243_v55 = vpop.f32.mrf.mxu0  ;;  %v1275_v56 = vpop.f32.mrf.mxu1  ;;  %v114_v39 = vld [vmem:[#allocation2 + $0xf0] sm:$0xff] }
  0xfa   :  { %v960_v54 = vld [vmem:[#allocation2 + $0x180] sm:$0xff]  ;;  %1065 = vst.msk [vmem:[%s2015_s3 + $0x90] sm:$0xff] %vm19_vm3, %v1001_v48  ;;  %v999_v58 = vadd.f32 %v1632_v1, %v928_v53  ;;  %865 = vst.msk [vmem:[#allocation2 + $0xa0] sm:$0xff] %vm19_vm3, %v800_v50  ;;  %v803_v60 = vadd.f32 %v1243_v55, %v107_v42  ;;  %v835_v61 = vadd.f32 %v1275_v56, %v139_v47  ;;  %v146_v44 = vld [vmem:[#allocation2 + $0x1f0] sm:$0xff] }
  0xfb   :  { %1097 = vst.msk [vmem:[%s2015_s3 + $0x190] sm:$0xff] %vm19_vm3, %v1033_v49  ;;  %v1031_v59 = vadd.f32 %v1632_v1, %v960_v54  ;;  %897 = vst.msk [vmem:[#allocation2 + $0x1a0] sm:$0xff] %vm19_vm3, %v832_v51  ;;  %v931_v63 = vld [vmem:[#allocation2 + $0x98] sm:$0xff]  ;;  %v608_v2 = vpop.f32.mrf.mxu0  ;;  %v736_v3 = vpop.f32.mrf.mxu1  ;;  %v112_v49 = vld [vmem:[#allocation2 + $0xe0] sm:$0xff] }
  0xfc   :  { %v963_v0 = vld [vmem:[#allocation2 + $0x198] sm:$0xff]  ;;  %1063 = vst.msk [vmem:[%s2015_s3 + $0x80] sm:$0xff] %vm19_vm3, %v999_v58  ;;  %v1002_v5 = vadd.f32 %v1632_v1, %v931_v63  ;;  %868 = vst.msk [vmem:[#allocation2 + $0xb8] sm:$0xff] %vm19_vm3, %v803_v60  ;;  %v801_v7 = vadd.f32 %v608_v2, %v105_v52  ;;  %v833_v8 = vadd.f32 %v736_v3, %v137_v57  ;;  %v144_v54 = vld [vmem:[#allocation2 + $0x1e0] sm:$0xff] }
  0xfd   :  { %1095 = vst.msk [vmem:[%s2015_s3 + $0x180] sm:$0xff] %vm19_vm3, %v1031_v59  ;;  %v1034_v6 = vadd.f32 %v1632_v1, %v963_v0  ;;  %900 = vst.msk [vmem:[#allocation2 + $0x1b8] sm:$0xff] %vm19_vm3, %v835_v61  ;;  %v929_v10 = vld [vmem:[#allocation2 + $0x88] sm:$0xff]  ;;  %v1246_v12 = vpop.f32.mrf.mxu0  ;;  %v1278_v13 = vpop.f32.mrf.mxu1  ;;  %v115_v59 = vld [vmem:[#allocation2 + $0xf8] sm:$0xff] }
  0xfe   :  { %v961_v11 = vld [vmem:[#allocation2 + $0x188] sm:$0xff]  ;;  %1066 = vst.msk [vmem:[%s2015_s3 + $0x98] sm:$0xff] %vm19_vm3, %v1002_v5  ;;  %v1000_v15 = vadd.f32 %v1632_v1, %v929_v10  ;;  %866 = vst.msk [vmem:[#allocation2 + $0xa8] sm:$0xff] %vm19_vm3, %v801_v7  ;;  %v806_v17 = vadd.f32 %v1246_v12, %v110_v62  ;;  %v838_v18 = vadd.f32 %v1278_v13, %v142_v4  ;;  %v147_v0 = vld [vmem:[#allocation2 + $0x1f8] sm:$0xff] }
  0xff   :  { %1098 = vst.msk [vmem:[%s2015_s3 + $0x198] sm:$0xff] %vm19_vm3, %v1034_v6  ;;  %v1032_v16 = vadd.f32 %v1632_v1, %v961_v11  ;;  %898 = vst.msk [vmem:[#allocation2 + $0x1a8] sm:$0xff] %vm19_vm3, %v833_v8  ;;  %v934_v20 = vld [vmem:[#allocation2 + $0xb0] sm:$0xff]  ;;  %v621_v22 = vpop.f32.mrf.mxu0  ;;  %v749_v23 = vpop.f32.mrf.mxu1  ;;  %v113_v6 = vld [vmem:[#allocation2 + $0xe8] sm:$0xff] }
 0x100   :  { %v966_v21 = vld [vmem:[#allocation2 + $0x1b0] sm:$0xff]  ;;  %1064 = vst.msk [vmem:[%s2015_s3 + $0x88] sm:$0xff] %vm19_vm3, %v1000_v15  ;;  %v1005_v25 = vadd.f32 %v1632_v1, %v934_v20  ;;  %871 = vst.msk [vmem:[#allocation2 + $0xd0] sm:$0xff] %vm19_vm3, %v806_v17  ;;  %v804_v27 = vadd.f32 %v621_v22, %v108_v9  ;;  %v836_v28 = vadd.f32 %v749_v23, %v140_v14  ;;  %v145_v11 = vld [vmem:[#allocation2 + $0x1e8] sm:$0xff] }
 0x101   :  { %1096 = vst.msk [vmem:[%s2015_s3 + $0x188] sm:$0xff] %vm19_vm3, %v1032_v16  ;;  %v1037_v26 = vadd.f32 %v1632_v1, %v966_v21  ;;  %903 = vst.msk [vmem:[#allocation2 + $0x1d0] sm:$0xff] %vm19_vm3, %v838_v18  ;;  %v932_v30 = vld [vmem:[#allocation2 + $0xa0] sm:$0xff]  ;;  %v1247_v32 = vpop.f32.mrf.mxu0  ;;  %v1279_v33 = vpop.f32.mrf.mxu1 }
 0x102   :  { %v964_v31 = vld [vmem:[#allocation2 + $0x1a0] sm:$0xff]  ;;  %1069 = vst.msk [vmem:[%s2015_s3 + $0xb0] sm:$0xff] %vm19_vm3, %v1005_v25  ;;  %v1003_v35 = vadd.f32 %v1632_v1, %v932_v30  ;;  %869 = vst.msk [vmem:[#allocation2 + $0xc0] sm:$0xff] %vm19_vm3, %v804_v27  ;;  %v807_v37 = vadd.f32 %v1247_v32, %v111_v19  ;;  %v839_v38 = vadd.f32 %v1279_v33, %v143_v24 }
 0x103   :  { %1101 = vst.msk [vmem:[%s2015_s3 + $0x1b0] sm:$0xff] %vm19_vm3, %v1037_v26  ;;  %v1035_v36 = vadd.f32 %v1632_v1, %v964_v31  ;;  %901 = vst.msk [vmem:[#allocation2 + $0x1c0] sm:$0xff] %vm19_vm3, %v836_v28  ;;  %v935_v40 = vld [vmem:[#allocation2 + $0xb8] sm:$0xff]  ;;  %v624_v42 = vpop.f32.mrf.mxu0  ;;  %v752_v43 = vpop.f32.mrf.mxu1 }
 0x104   :  { %v967_v41 = vld [vmem:[#allocation2 + $0x1b8] sm:$0xff]  ;;  %1067 = vst.msk [vmem:[%s2015_s3 + $0xa0] sm:$0xff] %vm19_vm3, %v1003_v35  ;;  %v1006_v45 = vadd.f32 %v1632_v1, %v935_v40  ;;  %872 = vst.msk [vmem:[#allocation2 + $0xd8] sm:$0xff] %vm19_vm3, %v807_v37  ;;  %v805_v47 = vadd.f32 %v624_v42, %v109_v29  ;;  %v837_v48 = vadd.f32 %v752_v43, %v141_v34 }
 0x105   :  { %1099 = vst.msk [vmem:[%s2015_s3 + $0x1a0] sm:$0xff] %vm19_vm3, %v1035_v36  ;;  %v1038_v46 = vadd.f32 %v1632_v1, %v967_v41  ;;  %904 = vst.msk [vmem:[#allocation2 + $0x1d8] sm:$0xff] %vm19_vm3, %v839_v38  ;;  %v933_v50 = vld [vmem:[#allocation2 + $0xa8] sm:$0xff]  ;;  %v1250_v52 = vpop.f32.mrf.mxu0  ;;  %v1282_v53 = vpop.f32.mrf.mxu1 }
 0x106   :  { %v965_v51 = vld [vmem:[#allocation2 + $0x1a8] sm:$0xff]  ;;  %1070 = vst.msk [vmem:[%s2015_s3 + $0xb8] sm:$0xff] %vm19_vm3, %v1006_v45  ;;  %v1004_v55 = vadd.f32 %v1632_v1, %v933_v50  ;;  %870 = vst.msk [vmem:[#allocation2 + $0xc8] sm:$0xff] %vm19_vm3, %v805_v47  ;;  %v810_v57 = vadd.f32 %v1250_v52, %v114_v39  ;;  %v842_v58 = vadd.f32 %v1282_v53, %v146_v44 }
 0x107   :  { %1102 = vst.msk [vmem:[%s2015_s3 + $0x1b8] sm:$0xff] %vm19_vm3, %v1038_v46  ;;  %v1036_v56 = vadd.f32 %v1632_v1, %v965_v51  ;;  %902 = vst.msk [vmem:[#allocation2 + $0x1c8] sm:$0xff] %vm19_vm3, %v837_v48  ;;  %v938_v60 = vld [vmem:[#allocation2 + $0xd0] sm:$0xff]  ;;  %v637_v62 = vpop.f32.mrf.mxu0  ;;  %v765_v63 = vpop.f32.mrf.mxu1 }
 0x108   :  { %v970_v61 = vld [vmem:[#allocation2 + $0x1d0] sm:$0xff]  ;;  %1068 = vst.msk [vmem:[%s2015_s3 + $0xa8] sm:$0xff] %vm19_vm3, %v1004_v55  ;;  %v1009_v2 = vadd.f32 %v1632_v1, %v938_v60  ;;  %875 = vst.msk [vmem:[#allocation2 + $0xf0] sm:$0xff] %vm19_vm3, %v810_v57  ;;  %v808_v4 = vadd.f32 %v637_v62, %v112_v49  ;;  %v840_v5 = vadd.f32 %v765_v63, %v144_v54 }
 0x109   :  { %1100 = vst.msk [vmem:[%s2015_s3 + $0x1a8] sm:$0xff] %vm19_vm3, %v1036_v56  ;;  %v1041_v3 = vadd.f32 %v1632_v1, %v970_v61  ;;  %907 = vst.msk [vmem:[#allocation2 + $0x1f0] sm:$0xff] %vm19_vm3, %v842_v58  ;;  %v936_v7 = vld [vmem:[#allocation2 + $0xc0] sm:$0xff]  ;;  %v1251_v9 = vpop.f32.mrf.mxu0  ;;  %v1283_v10 = vpop.f32.mrf.mxu1 }
 0x10a   :  { %v968_v8 = vld [vmem:[#allocation2 + $0x1c0] sm:$0xff]  ;;  %1073 = vst.msk [vmem:[%s2015_s3 + $0xd0] sm:$0xff] %vm19_vm3, %v1009_v2  ;;  %v1007_v12 = vadd.f32 %v1632_v1, %v936_v7  ;;  %873 = vst.msk [vmem:[#allocation2 + $0xe0] sm:$0xff] %vm19_vm3, %v808_v4  ;;  %v811_v14 = vadd.f32 %v1251_v9, %v115_v59  ;;  %v843_v15 = vadd.f32 %v1283_v10, %v147_v0 }
 0x10b   :  { %1105 = vst.msk [vmem:[%s2015_s3 + $0x1d0] sm:$0xff] %vm19_vm3, %v1041_v3  ;;  %v1039_v13 = vadd.f32 %v1632_v1, %v968_v8  ;;  %905 = vst.msk [vmem:[#allocation2 + $0x1e0] sm:$0xff] %vm19_vm3, %v840_v5  ;;  %v939_v16 = vld [vmem:[#allocation2 + $0xd8] sm:$0xff]  ;;  %v640_v18 = vpop.f32.mrf.mxu0  ;;  %v768_v19 = vpop.f32.mrf.mxu1 }
 0x10c   :  { %v971_v17 = vld [vmem:[#allocation2 + $0x1d8] sm:$0xff]  ;;  %1071 = vst.msk [vmem:[%s2015_s3 + $0xc0] sm:$0xff] %vm19_vm3, %v1007_v12  ;;  %v1010_v20 = vadd.f32 %v1632_v1, %v939_v16  ;;  %876 = vst.msk [vmem:[#allocation2 + $0xf8] sm:$0xff] %vm19_vm3, %v811_v14  ;;  %v809_v22 = vadd.f32 %v640_v18, %v113_v6  ;;  %v841_v23 = vadd.f32 %v768_v19, %v145_v11 }
 0x10d   :  { %1103 = vst.msk [vmem:[%s2015_s3 + $0x1c0] sm:$0xff] %vm19_vm3, %v1039_v13  ;;  %v1042_v21 = vadd.f32 %v1632_v1, %v971_v17  ;;  %908 = vst.msk [vmem:[#allocation2 + $0x1f8] sm:$0xff] %vm19_vm3, %v843_v15  ;;  %v937_v24 = vld [vmem:[#allocation2 + $0xc8] sm:$0xff] }
 0x10e   :  { %v969_v25 = vld [vmem:[#allocation2 + $0x1c8] sm:$0xff]  ;;  %1074 = vst.msk [vmem:[%s2015_s3 + $0xd8] sm:$0xff] %vm19_vm3, %v1010_v20  ;;  %v1008_v26 = vadd.f32 %v1632_v1, %v937_v24  ;;  %874 = vst.msk [vmem:[#allocation2 + $0xe8] sm:$0xff] %vm19_vm3, %v809_v22 }
 0x10f   :  { %1106 = vst.msk [vmem:[%s2015_s3 + $0x1d8] sm:$0xff] %vm19_vm3, %v1042_v21  ;;  %v1040_v27 = vadd.f32 %v1632_v1, %v969_v25  ;;  %906 = vst.msk [vmem:[#allocation2 + $0x1e8] sm:$0xff] %vm19_vm3, %v841_v23  ;;  %v942_v28 = vld [vmem:[#allocation2 + $0xf0] sm:$0xff] }
 0x110   :  { %v974_v29 = vld [vmem:[#allocation2 + $0x1f0] sm:$0xff]  ;;  %1072 = vst.msk [vmem:[%s2015_s3 + $0xc8] sm:$0xff] %vm19_vm3, %v1008_v26  ;;  %v1013_v30 = vadd.f32 %v1632_v1, %v942_v28 }
 0x111   :  { %1104 = vst.msk [vmem:[%s2015_s3 + $0x1c8] sm:$0xff] %vm19_vm3, %v1040_v27  ;;  %v1045_v31 = vadd.f32 %v1632_v1, %v974_v29  ;;  %v940_v32 = vld [vmem:[#allocation2 + $0xe0] sm:$0xff] }
 0x112   :  { %v972_v33 = vld [vmem:[#allocation2 + $0x1e0] sm:$0xff]  ;;  %1077 = vst.msk [vmem:[%s2015_s3 + $0xf0] sm:$0xff] %vm19_vm3, %v1013_v30  ;;  %v1011_v34 = vadd.f32 %v1632_v1, %v940_v32 }
 0x113   :  { %1109 = vst.msk [vmem:[%s2015_s3 + $0x1f0] sm:$0xff] %vm19_vm3, %v1045_v31  ;;  %v1043_v35 = vadd.f32 %v1632_v1, %v972_v33  ;;  %v943_v36 = vld [vmem:[#allocation2 + $0xf8] sm:$0xff] }
 0x114   :  { %v975_v37 = vld [vmem:[#allocation2 + $0x1f8] sm:$0xff]  ;;  %1075 = vst.msk [vmem:[%s2015_s3 + $0xe0] sm:$0xff] %vm19_vm3, %v1011_v34  ;;  %v1014_v38 = vadd.f32 %v1632_v1, %v943_v36 }
 0x115   :  { %1107 = vst.msk [vmem:[%s2015_s3 + $0x1e0] sm:$0xff] %vm19_vm3, %v1043_v35  ;;  %v1046_v39 = vadd.f32 %v1632_v1, %v975_v37  ;;  %v941_v40 = vld [vmem:[#allocation2 + $0xe8] sm:$0xff] }
 0x116   :  { %v973_v41 = vld [vmem:[#allocation2 + $0x1e8] sm:$0xff]  ;;  %1078 = vst.msk [vmem:[%s2015_s3 + $0xf8] sm:$0xff] %vm19_vm3, %v1014_v38  ;;  %v1012_v42 = vadd.f32 %v1632_v1, %v941_v40 }
 0x117   :  { %1110 = vst.msk [vmem:[%s2015_s3 + $0x1f8] sm:$0xff] %vm19_vm3, %v1046_v39  ;;  %v1044_v43 = vadd.f32 %v1632_v1, %v973_v41 }
 0x118   :  { %1076 = vst.msk [vmem:[%s2015_s3 + $0xe8] sm:$0xff] %vm19_vm3, %v1012_v42 }
 0x119   :  { %1108 = vst.msk [vmem:[%s2015_s3 + $0x1e8] sm:$0xff] %vm19_vm3, %v1044_v43 }

</bundles_post_ra>
